<compile_context>
chip_gen: v6e
topology: v6e:2x2x1
jax: 0.10.0
libtpu: 0.0.40
codegen_flags: <defaults>
</compile_context>

<pallas_src>
import jax
import jax.numpy as jnp
from jax.experimental import pallas as pl
from jax.experimental.pallas import tpu as pltpu

_LANES = 384       # 128 xyz points per VMEM row (multiple of 128 and of 3)
_POINT_PAD = 128   # pad N only to a whole 128-point row
_COEF_ROWS = 8     # 5 coefficient rows padded to a dense (8, 128)-tileable slab


def _rotate_kernel(coef_ref, x_ref, o_ref):
    """coef_ref: (1, 8, 384) f32 per-lane coefficient rows (constant per batch).
    x_ref / o_ref: (1, tm, 384) blocks of xyz-interleaved points."""
    w = coef_ref[0]                               # (8, 384) f32
    x = x_ref[0].astype(jnp.float32)              # (tm, 384)
    lanes = x.shape[-1]

    # out[l] = w0[l]*x[l] + wm1[l]*x[l-1] + wm2[l]*x[l-2]
    #                     + wp1[l]*x[l+1] + wp2[l]*x[l+2]
    # Sequential accumulation keeps only one rolled (XLU) temporary live at a
    # time.  The circular wrap of each roll is harmless: every wrapped lane is
    # paired with a zero coefficient (invariant of the coefficient table).
    out = w[0:1, :] * x
    out = out + w[1:2, :] * pltpu.roll(x, shift=1, axis=1)           # x[l-1]
    out = out + w[2:3, :] * pltpu.roll(x, shift=2, axis=1)           # x[l-2]
    out = out + w[3:4, :] * pltpu.roll(x, shift=lanes - 1, axis=1)   # x[l+1]
    out = out + w[4:5, :] * pltpu.roll(x, shift=lanes - 2, axis=1)   # x[l+2]
    o_ref[0] = out.astype(o_ref.dtype)


def _coef_table(R):
    """[B, 3, 3] rotation matrices -> [B, 8, 384] per-lane coefficient rows.

    Lane l holds coordinate c = l % 3 of point l // 3; its rotated value is
    R[c,0]*x[l-c] + R[c,1]*x[l-c+1] + R[c,2]*x[l-c+2], rewritten as a 5-tap
    lane stencil with coefficients that only depend on c (period 3 in l):
      row 0: w0  (offset  0)   row 1: wm1 (offset -1)   row 2: wm2 (offset -2)
      row 3: wp1 (offset +1)   row 4: wp2 (offset +2)   rows 5-7: zero padding
    """
    B = R.shape[0]
    R = R.astype(jnp.float32)
    zero = jnp.zeros((B,), jnp.float32)
    per_c = jnp.stack([
        jnp.stack([R[:, 0, 0], zero,       zero,       R[:, 0, 1], R[:, 0, 2]], -1),  # c=0
        jnp.stack([R[:, 1, 1], R[:, 1, 0], zero,       R[:, 1, 2], zero      ], -1),  # c=1
        jnp.stack([R[:, 2, 2], R[:, 2, 1], R[:, 2, 0], zero,       zero      ], -1),  # c=2
    ], axis=1)                                          # [B, 3, 5]
    lane_c = jnp.arange(_LANES) % 3                     # (384,)
    coef5 = jnp.transpose(per_c[:, lane_c, :], (0, 2, 1))   # [B, 5, 384]
    return jnp.pad(coef5, ((0, 0), (0, _COEF_ROWS - 5), (0, 0)))  # [B, 8, 384]


def _rotate_rows_pallas(x_rows, coef, *, block_rows=1024):
    """x_rows: [B, rows, 384] xyz-interleaved; coef: [B, 8, 384] f32."""
    B, rows, W = x_rows.shape
    # tm is either a multiple of 8 (block_rows) or the full row extent; partial
    # trailing blocks are allowed (masked stores) and stay lane-dense (W=384).
    tm = block_rows if rows > block_rows else rows
    grid = (B, pl.cdiv(rows, tm))
    n_points = B * rows * 128
    cost = pl.CostEstimate(
        flops=15 * n_points,                    # 5-tap stencil per lane, 3 lanes/pt
        transcendentals=0,
        bytes_accessed=int(2 * x_rows.size * x_rows.dtype.itemsize + coef.size * 4),
    )
    return pl.pallas_call(
        _rotate_kernel,
        out_shape=jax.ShapeDtypeStruct((B, rows, W), x_rows.dtype),
        grid_spec=pltpu.PrefetchScalarGridSpec(
            num_scalar_prefetch=0,
            grid=grid,
            in_specs=[
                # Coefficient slab: block index depends only on b, so Pallas
                # re-DMAs the 12 KiB table only at batch boundaries.
                pl.BlockSpec((1, _COEF_ROWS, W), lambda b, j: (b, 0, 0)),
                pl.BlockSpec((1, tm, W), lambda b, j: (b, j, 0)),
            ],
            out_specs=pl.BlockSpec((1, tm, W), lambda b, j: (b, j, 0)),
        ),
        compiler_params=pltpu.CompilerParams(
            dimension_semantics=("parallel", "parallel"),
            vmem_limit_bytes=32 * 1024 * 1024,
        ),
        cost_estimate=cost,
    )(coef, x_rows)


def _rotation_matrices(key, batch, rotation_range_deg):
    """Per-sample Euler rotation matrices R = Rz @ Ry @ Rx (float32)."""
    angles = jax.random.uniform(
        key, (batch, 3), dtype=jnp.float32,
        minval=-rotation_range_deg, maxval=rotation_range_deg) * (jnp.pi / 180.0)
    a, b, c = angles[:, 0], angles[:, 1], angles[:, 2]
    ca, sa = jnp.cos(a), jnp.sin(a)
    cb, sb = jnp.cos(b), jnp.sin(b)
    cc, sc = jnp.cos(c), jnp.sin(c)
    one, zero = jnp.ones_like(a), jnp.zeros_like(a)
    Rx = jnp.stack([jnp.stack([one, zero, zero], -1),
                    jnp.stack([zero, ca, -sa], -1),
                    jnp.stack([zero, sa, ca], -1)], -2)
    Ry = jnp.stack([jnp.stack([cb, zero, sb], -1),
                    jnp.stack([zero, one, zero], -1),
                    jnp.stack([-sb, zero, cb], -1)], -2)
    Rz = jnp.stack([jnp.stack([cc, -sc, zero], -1),
                    jnp.stack([sc, cc, zero], -1),
                    jnp.stack([zero, zero, one], -1)], -2)
    return jnp.einsum("bij,bjk,bkl->bil", Rz, Ry, Rx)    # [B, 3, 3]


def rotate_fibers(x, rotation_range, key, *, block_rows=1024):
    """x: [B, N, 3] fibers of 3-D points -> rotated fibers (same shape/dtype)."""
    B, N, C = x.shape
    assert C == 3, "last dim must hold xyz coordinates"
    R = _rotation_matrices(key, B, rotation_range)
    coef = _coef_table(R)

    # Pad only to a whole 128-point row; the common N % 128 == 0 case incurs
    # zero extra HBM traffic.  The reshape to [B, rows, 384] is free
    # (contiguous); each 384-lane row holds 128 whole xyz points.
    pad = (-N) % _POINT_PAD
    xp = jnp.pad(x, ((0, 0), (0, pad), (0, 0))) if pad else x
    rows = (N + pad) // 128
    x_rows = xp.reshape(B, rows, _LANES)
    y_rows = _rotate_rows_pallas(x_rows, coef, block_rows=block_rows)
    y = y_rows.reshape(B, N + pad, 3)
    return y[:, :N, :] if pad else y


class Rotate:
    """JAX/Pallas equivalent of the PyTorch Rotate module (forward pass)."""
    # TODO(synk): original rotate_fibers source not provided; PyTorch's global
    # RNG for angle sampling is reproduced deterministically via an explicit
    # jax.random key, and the Euler composition order Rz@Ry@Rx (degrees) is
    # assumed.
    def __init__(self, rotation_range):
        self.rotation_range = float(rotation_range)
        self._rotate = jax.jit(lambda x, key: rotate_fibers(x, self.rotation_range, key))

    def __call__(self, x, key):
        return self._rotate(x, key)


if __name__ == "__main__":
    key = jax.random.PRNGKey(0)
    kx, kang = jax.random.split(key)

    B, N = 2, 1024
    x = jax.random.normal(kx, (B, N, 3), dtype=jnp.float32)

    mod = Rotate(rotation_range=30.0)
    y = jax.block_until_ready(mod(x, kang))

    R = _rotation_matrices(kang, B, 30.0)
    y_ref = jnp.einsum("bdk,bnk->bnd", R, x).astype(x.dtype)
    assert y.shape == x.shape and y.dtype == x.dtype
    assert jnp.allclose(y, y_ref, atol=1e-4, rtol=1e-4), \
        float(jnp.max(jnp.abs(y - y_ref)))

    # Ragged point count (exercises the pad/slice path, rows not multiple of 8).
    N2 = 300
    x2 = jax.random.normal(kx, (B, N2, 3), dtype=jnp.float32)
    y2 = jax.block_until_ready(mod(x2, kang))
    y2_ref = jnp.einsum("bdk,bnk->bnd", R, x2).astype(x2.dtype)
    assert y2.shape == x2.shape
    assert jnp.allclose(y2, y2_ref, atol=1e-4, rtol=1e-4), \
        float(jnp.max(jnp.abs(y2 - y2_ref)))

    # bf16 inputs: dtype preserved, accumulation stays in f32.
    xb = x.astype(jnp.bfloat16)
    yb = jax.block_until_ready(mod(xb, kang))
    assert yb.dtype == jnp.bfloat16 and yb.shape == xb.shape
    yb_ref = jnp.einsum("bdk,bnk->bnd", R, xb.astype(jnp.float32))
    assert jnp.allclose(yb.astype(jnp.float32), yb_ref, atol=3e-2, rtol=3e-2)

    print("KERNEL_OK")
</pallas_src>

<mosaic_0001>
module attributes {stable_mosaic.version = 11 : i64} {
  func.func @_rotate_kernel(%arg0: i32, %arg1: i32, %arg2: memref<1x8x384xf32, #tpu.memory_space<vmem>>, %arg3: memref<1x8x384xf32, #tpu.memory_space<vmem>>, %arg4: memref<1x8x384xf32, #tpu.memory_space<vmem>>) attributes {dimension_semantics = [#tpu.dimension_semantics<parallel>, #tpu.dimension_semantics<parallel>], iteration_bounds = array<i64: 2, 1>, scalar_prefetch = 0 : i64, scratch_operands = 0 : i64, tpu.core_type = #tpu.core_type<tc>, window_params = [{transform_indices = @transform_0, window_bounds = array<i64: 1, 8, 384>}, {transform_indices = @transform_1, window_bounds = array<i64: 1, 8, 384>}, {transform_indices = @transform_2, window_bounds = array<i64: 1, 8, 384>}]} {
    %c0 = arith.constant 0 : index
    %c0_0 = arith.constant 0 : index
    %c0_1 = arith.constant 0 : index
    %0 = vector.load %arg2[%c0, %c0_0, %c0_1] : memref<1x8x384xf32, #tpu.memory_space<vmem>>, vector<1x8x384xf32>
    %1 = vector.shape_cast %0 : vector<1x8x384xf32> to vector<8x384xf32>
    %c0_2 = arith.constant 0 : index
    %c0_3 = arith.constant 0 : index
    %c0_4 = arith.constant 0 : index
    %2 = vector.load %arg3[%c0_2, %c0_3, %c0_4] : memref<1x8x384xf32, #tpu.memory_space<vmem>>, vector<1x8x384xf32>
    %3 = vector.shape_cast %2 : vector<1x8x384xf32> to vector<8x384xf32>
    %4 = vector.extract_strided_slice %1 {offsets = [0, 0], sizes = [1, 384], strides = [1, 1]} : vector<8x384xf32> to vector<1x384xf32>
    %5 = vector.broadcast %4 : vector<1x384xf32> to vector<8x384xf32>
    %6 = arith.mulf %5, %3 : vector<8x384xf32>
    %7 = vector.extract_strided_slice %1 {offsets = [1, 0], sizes = [1, 384], strides = [1, 1]} : vector<8x384xf32> to vector<1x384xf32>
    %c1_i32 = arith.constant 1 : i32
    %8 = tpu.dynamic_rotate %3 by %c1_i32 dim 1 : vector<8x384xf32>, i32 -> vector<8x384xf32>
    %9 = vector.broadcast %7 : vector<1x384xf32> to vector<8x384xf32>
    %10 = arith.mulf %9, %8 : vector<8x384xf32>
    %11 = arith.addf %6, %10 : vector<8x384xf32>
    %12 = vector.extract_strided_slice %1 {offsets = [2, 0], sizes = [1, 384], strides = [1, 1]} : vector<8x384xf32> to vector<1x384xf32>
    %c2_i32 = arith.constant 2 : i32
    %13 = tpu.dynamic_rotate %3 by %c2_i32 dim 1 : vector<8x384xf32>, i32 -> vector<8x384xf32>
    %14 = vector.broadcast %12 : vector<1x384xf32> to vector<8x384xf32>
    %15 = arith.mulf %14, %13 : vector<8x384xf32>
    %16 = arith.addf %11, %15 : vector<8x384xf32>
    %17 = vector.extract_strided_slice %1 {offsets = [3, 0], sizes = [1, 384], strides = [1, 1]} : vector<8x384xf32> to vector<1x384xf32>
    %c383_i32 = arith.constant 383 : i32
    %18 = tpu.dynamic_rotate %3 by %c383_i32 dim 1 : vector<8x384xf32>, i32 -> vector<8x384xf32>
    %19 = vector.broadcast %17 : vector<1x384xf32> to vector<8x384xf32>
    %20 = arith.mulf %19, %18 : vector<8x384xf32>
    %21 = arith.addf %16, %20 : vector<8x384xf32>
    %22 = vector.extract_strided_slice %1 {offsets = [4, 0], sizes = [1, 384], strides = [1, 1]} : vector<8x384xf32> to vector<1x384xf32>
    %c382_i32 = arith.constant 382 : i32
    %23 = tpu.dynamic_rotate %3 by %c382_i32 dim 1 : vector<8x384xf32>, i32 -> vector<8x384xf32>
    %24 = vector.broadcast %22 : vector<1x384xf32> to vector<8x384xf32>
    %25 = arith.mulf %24, %23 : vector<8x384xf32>
    %26 = arith.addf %21, %25 : vector<8x384xf32>
    %c0_5 = arith.constant 0 : index
    %c0_6 = arith.constant 0 : index
    %c0_7 = arith.constant 0 : index
    %27 = vector.load %arg4[%c0_5, %c0_6, %c0_7] : memref<1x8x384xf32, #tpu.memory_space<vmem>>, vector<1x8x384xf32>
    %28 = vector.shape_cast %27 : vector<1x8x384xf32> to vector<8x384xf32>
    %29 = vector.shape_cast %26 : vector<8x384xf32> to vector<1x8x384xf32>
    tpu.vector_store %arg4[%c0_5, %c0_6, %c0_7], %29 {strides = array<i32>} : memref<1x8x384xf32, #tpu.memory_space<vmem>>, vector<1x8x384xf32>,
    return
  }
  func.func @transform_0(%arg0: i32, %arg1: i32) -> (i32, i32, i32) {
    %c0_i32 = arith.constant 0 : i32
    %c0_i32_0 = arith.constant 0 : i32
    %c0_i32_1 = arith.constant 0 : i32
    return %arg0, %c0_i32, %c0_i32_0 : i32, i32, i32
  }
  func.func @transform_1(%arg0: i32, %arg1: i32) -> (i32, i32, i32) {
    %c0_i32 = arith.constant 0 : i32
    %c0_i32_0 = arith.constant 0 : i32
    return %arg0, %arg1, %c0_i32 : i32, i32, i32
  }
  func.func @transform_2(%arg0: i32, %arg1: i32) -> (i32, i32, i32) {
    %c0_i32 = arith.constant 0 : i32
    %c0_i32_0 = arith.constant 0 : i32
    return %arg0, %arg1, %c0_i32 : i32, i32, i32
  }
}

</mosaic_0001>

<bundles_post_ra>
// kernel: _lambda_.1
= control target key start
LH: loop header
LB: loop body
LE: loop exit
PB: predicated region body
PF: predicated region fallthrough
CT: control target
= control target key end

     0   :  { %s524_s9 = smov 0   ;;  %s526_s10 = smov 0   ;;  %s605_s0 = inlined_call_operand.vmem [shape: f32[2,8,384], index: 0, kind: input, shape index: {}]   ;;  %s606_s1 = inlined_call_operand.vmem [shape: f32[2,8,384], index: 1, kind: input, shape index: {}]   ;;  %s607_s2 = inlined_call_operand.vmem [shape: f32[2,8,384], index: 2, kind: output, shape index: {}]  }
   0x1   :  { %s528_s11 = smov 0  }
   0x2 LB: > { %s24_s12 = sadd.s32 1, %s499_s10  ;;  %p446_p0 = scmp.ge.s32.totalorder %s503_s11, 1  ;;  %s503_s11 = sphi %s528_s11, %s12_s11   ;;  %s499_s10 = sphi %s526_s10, %s609_s10   ;;  %s495_s9 = sphi %s524_s9, %s608_s9  }
   0x3   : > { %p26_p1 = scmp.ge.s32.totalorder %s24_s12, 2  ;;  %p142_p2 = scmp.lt.s32.totalorder %s503_s11, 3 }
   0x5   : > { %s611_s12 = smov (%p26_p1, %s24_s12), 0  ;;  %p143_p3 = pnand %p446_p0, %p142_p2 }
   0x6   : > { %p177_p4 = scmp.lt.s32.totalorder (!%p143_p3), %s495_s9, 1  ;;  %s505_s20 = smov (!%p143_p3), 1  }
   0x7   : > { %146 = sbr.rel (%p143_p3) target bundleno = 159 (0x9f), region = 28  ;;  %s506_s21 = smov (!%p143_p3), 2  }
   0x8   : > { %s507_s22 = smov (!%p143_p3), 127   ;;  %s508_s23 = smov (!%p143_p3), 126  }
   0xc   : > { %v206_v0 = vlaneseq  ;;  %s613_s9 = smov (!%p177_p4, %s495_s9), 1 }
   0xd   : > { %s544_s13 = smul.u32 24, %s613_s9 }
   0xe   : > { %v542_v1 = vshrl.u32 %v206_v0, 7  ;;  %v564_v15 = vand.u32 127, %v206_v0 }
   0xf   : > { %s190_s16 = scalar_lea.vmem %s606_s1, %s544_s13  ;;  %s181_s19 = scalar_lea.vmem %s605_s0, %s544_s13 }
  0x10   : > { %v208_v2 = vsub.s32 0, %v542_v1  ;;  %v205_v3 = vld [vmem:[%s190_s16 + $0x10] sm:$0xff]  ;;  %v203_v4 = vld [vmem:[%s190_s16] sm:$0xff]  ;;  %v557_v6 = vld [vmem:[%s181_s19 + $0x8] sm:$0xff]  ;;  %v235_v16 = vsub.s32 1, %v542_v1  ;;  %vm229_vm0 = vcmp.lt.s32.totalorder %v564_v15, 1  ;;  %s199_s26 = scalar_lea.vmem %s607_s2, %s544_s13 }
  0x11   : > { %225 = vrot.lane.b32.xlu1 %v205_v3, %s505_s20  ;;  %221 = vrot.lane.b32.xlu0 %v203_v4, %s505_s20  ;;  %v555_v5 = vld [vmem:[%s181_s19] sm:$0xff]  ;;  %v204_v7 = vld [vmem:[%s190_s16 + $0x8] sm:$0xff]  ;;  %v263_v21 = vsub.s32 2, %v542_v1  ;;  %vm257_vm1 = vcmp.lt.s32.totalorder %v564_v15, 2  ;;  %v291_v31 = vsub.s32 3, %v542_v1  ;;  %vm285_vm2 = vcmp.lt.s32.totalorder %v564_v15, 127 }
  0x12   : > { %v209_v8 = vrot.slane %v555_v5, %v208_v2  ;;  %v560_v9 = vld [vmem:[%s181_s19 + $0x10] sm:$0xff]  ;;  %v213_v10 = vrot.slane %v557_v6, %v208_v2  ;;  %v236_v17 = vrot.slane %v555_v5, %v235_v16  ;;  %v240_v23 = vrot.slane %v557_v6, %v235_v16 }
  0x13   : > { %v217_v11 = vrot.slane %v560_v9, %v208_v2  ;;  %v244_v24 = vrot.slane %v560_v9, %v235_v16  ;;  %v264_v30 = vrot.slane %v555_v5, %v263_v21  ;;  %v268_v34 = vrot.slane %v557_v6, %v263_v21 }
  0x14   : > { %v218_v12 = vmul.f32 %v209_v8, %v203_v4  ;;  %v219_v13 = vmul.f32 %v213_v10, %v204_v7  ;;  %v272_v35 = vrot.slane %v560_v9, %v263_v21  ;;  %v292_v46 = vrot.slane %v555_v5, %v291_v31 }
  0x15   : > { %251 = vrot.lane.b32.xlu1 %v203_v4, %s506_s21  ;;  %223 = vrot.lane.b32.xlu0 %v204_v7, %s505_s20  ;;  %v220_v14 = vmul.f32 %v217_v11, %v205_v3  ;;  %v319_v53 = vsub.s32 4, %v542_v1  ;;  %v296_v55 = vrot.slane %v557_v6, %v291_v31  ;;  %v300_v56 = vrot.slane %v560_v9, %v291_v31 }
  0x16   : > { %vm313_vm3 = vcmp.lt.s32.totalorder %v564_v15, 126 }
  0x17   : > { %v328_v62 = vrot.slane %v560_v9, %v319_v53  ;;  %v320_v1 = vrot.slane %v555_v5, %v319_v53  ;;  %v324_v2 = vrot.slane %v557_v6, %v319_v53 }
  0x19   : > { %255 = vrot.lane.b32.xlu1 %v205_v3, %s506_s21  ;;  %253 = vrot.lane.b32.xlu0 %v204_v7, %s506_s21 }
  0x1d   : > { %281 = vrot.lane.b32.xlu1 %v204_v7, %s507_s22  ;;  %279 = vrot.lane.b32.xlu0 %v203_v4, %s507_s22 }
  0x21   : > { %307 = vrot.lane.b32.xlu1 %v203_v4, %s508_s23  ;;  %283 = vrot.lane.b32.xlu0 %v205_v3, %s507_s22 }
  0x25   : > { %311 = vrot.lane.b32.xlu1 %v205_v3, %s508_s23  ;;  %309 = vrot.lane.b32.xlu0 %v204_v7, %s508_s23 }
  0x83   : > { %v226_v18 = vpop.permute.xlu1 %225  ;;  %v222_v19 = vpop.permute.xlu0 %221 }
  0x84   : > { %v232_v20 = vsel %vm229_vm0, %v226_v18, %v222_v19 }
  0x85   : > { %v245_v22 = vmul.f32 %v236_v17, %v232_v20 }
  0x87   : > { %v248_v25 = vadd.f32 %v245_v22, %v218_v12  ;;  %v252_v26 = vpop.permute.xlu1 %251  ;;  %v224_v27 = vpop.permute.xlu0 %223 }
  0x88   : > { %v230_v28 = vsel %vm229_vm0, %v224_v27, %v226_v18  ;;  %v231_v29 = vsel %vm229_vm0, %v222_v19, %v224_v27 }
  0x89   : > { %v246_v32 = vmul.f32 %v240_v23, %v231_v29  ;;  %v247_v33 = vmul.f32 %v244_v24, %v230_v28 }
  0x8b   : > { %v249_v36 = vadd.f32 %v246_v32, %v219_v13  ;;  %v250_v37 = vadd.f32 %v247_v33, %v220_v14  ;;  %v256_v38 = vpop.permute.xlu1 %255  ;;  %v254_v39 = vpop.permute.xlu0 %253 }
  0x8c   : > { %v260_v40 = vsel %vm257_vm1, %v256_v38, %v252_v26  ;;  %v258_v41 = vsel %vm257_vm1, %v254_v39, %v256_v38  ;;  %v259_v42 = vsel %vm257_vm1, %v252_v26, %v254_v39 }
  0x8d   : > { %v273_v43 = vmul.f32 %v264_v30, %v260_v40  ;;  %v274_v44 = vmul.f32 %v268_v34, %v259_v42  ;;  %v275_v45 = vmul.f32 %v272_v35, %v258_v41 }
  0x8f   : > { %v276_v47 = vadd.f32 %v273_v43, %v248_v25  ;;  %v277_v48 = vadd.f32 %v274_v44, %v249_v36  ;;  %v278_v49 = vadd.f32 %v275_v45, %v250_v37  ;;  %v282_v50 = vpop.permute.xlu1 %281  ;;  %v280_v51 = vpop.permute.xlu0 %279 }
  0x90   : > { %v287_v52 = vsel %vm285_vm2, %v280_v51, %v282_v50 }
  0x91   : > { %v301_v54 = vmul.f32 %v292_v46, %v287_v52 }
  0x93   : > { %v304_v57 = vadd.f32 %v301_v54, %v276_v47  ;;  %v308_v58 = vpop.permute.xlu1 %307  ;;  %v284_v59 = vpop.permute.xlu0 %283 }
  0x94   : > { %v286_v60 = vsel %vm285_vm2, %v282_v50, %v284_v59  ;;  %v288_v61 = vsel %vm285_vm2, %v284_v59, %v280_v51 }
  0x95   : > { %v302_v63 = vmul.f32 %v296_v55, %v286_v60  ;;  %v303_v0 = vmul.f32 %v300_v56, %v288_v61 }
  0x97   : > { %v305_v3 = vadd.f32 %v302_v63, %v277_v48  ;;  %v306_v4 = vadd.f32 %v303_v0, %v278_v49  ;;  %v312_v7 = vpop.permute.xlu1 %311  ;;  %v310_v8 = vpop.permute.xlu0 %309 }
  0x98   : > { %v316_v10 = vsel %vm313_vm3, %v312_v7, %v308_v58  ;;  %v314_v11 = vsel %vm313_vm3, %v310_v8, %v312_v7  ;;  %v315_v12 = vsel %vm313_vm3, %v308_v58, %v310_v8 }
  0x99   : > { %v331_v13 = vmul.f32 %v328_v62, %v316_v10  ;;  %v329_v14 = vmul.f32 %v320_v1, %v315_v12  ;;  %v330_v16 = vmul.f32 %v324_v2, %v314_v11 }
  0x9b   : > { %v334_v9 = vadd.f32 %v331_v13, %v306_v4  ;;  %v332_v15 = vadd.f32 %v329_v14, %v304_v57  ;;  %v333_v17 = vadd.f32 %v330_v16, %v305_v3 }
  0x9d   : > { %337 = vst [vmem:[%s199_s26 + $0x10] sm:$0xff] %v334_v9  ;;  %335 = vst [vmem:[%s199_s26] sm:$0xff] %v332_v15 }
  0x9e   : > { %336 = vst [vmem:[%s199_s26 + $0x8] sm:$0xff] %v333_v17 }
  0x9f PF: > { %s12_s11 = sadd.s32 1, %s503_s11   ;;  %s608_s9 = smov %s499_s10 }
  0xa0   : > { %p9_p5 = scmp.ge.s32.totalorder %s12_s11, 4   ;;  %s609_s10 = smov %s611_s12 }
  0xa2   :  { %11 = sbr.rel (!%p9_p5) target bundleno = 2 (0x2), region = 61 }

</bundles_post_ra>
